<compile_context>
chip_gen: v7x
topology: tpu7x:2x2x1
jax: 0.10.0
libtpu: 0.0.40
codegen_flags: <defaults>
</compile_context>

<pallas_src>
import jax
import jax.numpy as jnp
import numpy as np
from jax.experimental import pallas as pl
from jax.experimental.pallas import tpu as pltpu

BN_EPS = 1e-5


# ----------------------------------------------------------------------------
# Fused residual-block kernel (single invocation, batch folded into rows)
# ----------------------------------------------------------------------------
def _make_block_kernel(H, W, Cin, Cout, has_proj):
    def kernel(x_ref, w1_ref, w2_ref, ws_ref, b_ref, o_ref):
        # x_ref : (N*H, W*Cin)        lane-dense input (row = n*H+h, lane = w*Cin+ci)
        # w1_ref: (3, W*Cin,  W*Cout) banded conv1 weights, BN1 scale folded (bf16)
        # w2_ref: (3, W*Cout, W*Cout) banded conv2 weights, BN2 scale folded (bf16)
        # ws_ref: (W*Cin, W*Cout)     block-diag 1x1 projection (BN folded); unused if identity
        # b_ref : (3, W*Cout)         lane-tiled biases: bn1, bn2, shortcut
        # o_ref : (N*H, W*Cout)       lane-dense output
        X = x_ref[...]                                     # (NH, W*Cin) f32
        NH = X.shape[0]

        # Row-validity masks for the kh = 0 / kh = 2 taps (hoisted out of loops).
        h_idx = jax.lax.broadcasted_iota(jnp.int32, (NH, 1), 0) % H
        valid_up = h_idx >= 1                              # row above exists (dh = -1)
        valid_dn = h_idx < (H - 1)                         # row below exists (dh = +1)

        def conv3x3(inp, wb_ref):
            """inp: (NH, W*Cc) f32; wb_ref: (3, W*Cc, W*Cout) banded weights (bf16)."""
            acc = None
            for t, dh in enumerate((-1, 0, 1)):
                if dh == 0:
                    tap = inp
                else:
                    rolled = pltpu.roll(inp, shift=(-dh) % NH, axis=0)   # sublane roll (XLU)
                    mask = valid_up if dh == -1 else valid_dn
                    tap = jnp.where(mask, rolled, 0.0)
                part = jnp.dot(tap.astype(jnp.bfloat16), wb_ref[t],
                               preferred_element_type=jnp.float32)
                acc = part if acc is None else acc + part
            return acc                                     # (NH, W*Cout) f32

        # ---- conv1 + folded BN1 + ReLU (full-width 128-lane epilogue) --------
        h1 = jnp.maximum(conv3x3(X, w1_ref) + b_ref[0:1, :], 0.0)

        # ---- shortcut: 1x1 projection (block-diag matmul) or identity --------
        if has_proj:
            sc = jnp.dot(X.astype(jnp.bfloat16), ws_ref[...],
                         preferred_element_type=jnp.float32) + b_ref[2:3, :]
        else:
            sc = X                                         # Cin == Cout: layouts match

        # ---- conv2 + folded BN2 + residual + ReLU ----------------------------
        out = jnp.maximum(conv3x3(h1, w2_ref) + b_ref[1:2, :] + sc, 0.0)
        o_ref[...] = out.astype(o_ref.dtype)               # lane-dense unmasked store

    return kernel


# ----------------------------------------------------------------------------
# Wrapper: BN folding, banded-weight construction, pallas_call
# ----------------------------------------------------------------------------
def fold_bn(gamma, beta, mean, var):
    scale = gamma / jnp.sqrt(var + BN_EPS)
    return scale, beta - mean * scale


def _banded_weights(w_oihw, scale, W, Cout):
    """(Cout, Cc, 3, 3) OIHW conv weights (with BN scale folded) ->
    (3, W*Cc, W*Cout).  Band t encodes row offset dh = t-1; the kw shifts and
    the W-boundary zero padding live in the band structure."""
    Cc = w_oihw.shape[1]
    bands = []
    for kh in range(3):
        acc = jnp.zeros((W * Cc, W * Cout), jnp.float32)
        for kw in range(3):
            tap = w_oihw[:, :, kh, kw].T * scale[None, :]          # (Cc, Cout)
            shift = jnp.eye(W, k=1 - kw, dtype=jnp.float32)        # w_in = w_out + (kw-1)
            acc = acc + jnp.einsum("ab,ij->aibj", shift, tap).reshape(W * Cc, W * Cout)
        bands.append(acc)
    return jnp.stack(bands)                                        # (3, W*Cc, W*Cout)


def residual_block_forward(x_nchw, p, stride=1):
    if stride != 1:
        # TODO(synk): strided (downsampling) variant not implemented in Pallas path.
        raise NotImplementedError("residual_block_forward: stride != 1 unsupported")

    x = jnp.transpose(x_nchw, (0, 2, 3, 1)).astype(jnp.float32)    # NCHW -> NHWC
    N, H, W, Cin = x.shape
    Cout = p["w1"].shape[0]
    has_proj = (Cin != Cout)

    # Fold BN scale into the conv weights; keep only per-channel biases.
    s1, b1 = fold_bn(p["bn1_g"], p["bn1_b"], p["bn1_m"], p["bn1_v"])
    s2, b2 = fold_bn(p["bn2_g"], p["bn2_b"], p["bn2_m"], p["bn2_v"])
    w1b = _banded_weights(p["w1"], s1, W, Cout).astype(jnp.bfloat16)   # (3, W*Cin,  W*Cout)
    w2b = _banded_weights(p["w2"], s2, W, Cout).astype(jnp.bfloat16)   # (3, W*Cout, W*Cout)

    if has_proj:
        ss, bs = fold_bn(p["bns_g"], p["bns_b"], p["bns_m"], p["bns_v"])
        ws = p["ws"][:, :, 0, 0].T * ss[None, :]                       # (Cin, Cout)
        wsb = jnp.einsum("ab,ij->aibj", jnp.eye(W, dtype=jnp.float32), ws
                         ).reshape(W * Cin, W * Cout).astype(jnp.bfloat16)
    else:
        wsb = jnp.zeros((W * Cin, W * Cout), jnp.bfloat16)             # unused
        bs = jnp.zeros((Cout,), jnp.float32)

    # Lane-tiled biases in the (w*Cout + co) lane layout.
    bias = jnp.stack([jnp.tile(b1, W), jnp.tile(b2, W), jnp.tile(bs, W)]
                     ).astype(jnp.float32)                             # (3, W*Cout)

    # Lane-dense input: row = n*H + h, lane = w*Cin + ci (batch folded into M).
    X = x.reshape(N * H, W * Cin)

    kernel = _make_block_kernel(H, W, Cin, Cout, has_proj)
    out = pl.pallas_call(
        kernel,
        out_shape=jax.ShapeDtypeStruct((N * H, W * Cout), jnp.float32),
        in_specs=[pl.BlockSpec(memory_space=pltpu.MemorySpace.VMEM)] * 5,
        out_specs=pl.BlockSpec(memory_space=pltpu.MemorySpace.VMEM),
        compiler_params=pltpu.CompilerParams(vmem_limit_bytes=32 * 1024 * 1024),
    )(X, w1b, w2b, wsb, bias)

    out = out.reshape(N, H, W, Cout)                                   # free view reshape
    return jnp.transpose(out, (0, 3, 1, 2))                            # NHWC -> NCHW


# ----------------------------------------------------------------------------
# Pure-JAX reference (mirrors the PyTorch forward, eval-mode BatchNorm)
# ----------------------------------------------------------------------------
def reference_forward(x, p):
    def conv(x, w, pad):
        return jax.lax.conv_general_dilated(
            x, w, (1, 1), ((pad, pad), (pad, pad)),
            dimension_numbers=("NCHW", "OIHW", "NCHW"))

    def bn(x, g, b, m, v):
        return (g[None, :, None, None] * (x - m[None, :, None, None])
                / jnp.sqrt(v[None, :, None, None] + BN_EPS)
                + b[None, :, None, None])

    out = jax.nn.relu(bn(conv(x, p["w1"], 1), p["bn1_g"], p["bn1_b"],
                         p["bn1_m"], p["bn1_v"]))
    out = bn(conv(out, p["w2"], 1), p["bn2_g"], p["bn2_b"], p["bn2_m"], p["bn2_v"])
    if p["w1"].shape[1] != p["w1"].shape[0]:
        sc = bn(conv(x, p["ws"], 0), p["bns_g"], p["bns_b"], p["bns_m"], p["bns_v"])
    else:
        sc = x
    return jax.nn.relu(out + sc)


# ----------------------------------------------------------------------------
# Deterministic parameter init + test
# ----------------------------------------------------------------------------
def make_params(key, cin, cout):
    ks = jax.random.split(key, 16)
    p = {
        "w1": jax.random.normal(ks[0], (cout, cin, 3, 3), jnp.float32) * 0.1,
        "w2": jax.random.normal(ks[1], (cout, cout, 3, 3), jnp.float32) * 0.1,
        "bn1_g": jax.random.uniform(ks[2], (cout,), jnp.float32, 0.5, 1.5),
        "bn1_b": jax.random.normal(ks[3], (cout,), jnp.float32) * 0.1,
        "bn1_m": jax.random.normal(ks[4], (cout,), jnp.float32) * 0.1,
        "bn1_v": jax.random.uniform(ks[5], (cout,), jnp.float32, 0.5, 1.5),
        "bn2_g": jax.random.uniform(ks[6], (cout,), jnp.float32, 0.5, 1.5),
        "bn2_b": jax.random.normal(ks[7], (cout,), jnp.float32) * 0.1,
        "bn2_m": jax.random.normal(ks[8], (cout,), jnp.float32) * 0.1,
        "bn2_v": jax.random.uniform(ks[9], (cout,), jnp.float32, 0.5, 1.5),
    }
    if cin != cout:
        p.update({
            "ws": jax.random.normal(ks[10], (cout, cin, 1, 1), jnp.float32) * 0.1,
            "bns_g": jax.random.uniform(ks[11], (cout,), jnp.float32, 0.5, 1.5),
            "bns_b": jax.random.normal(ks[12], (cout,), jnp.float32) * 0.1,
            "bns_m": jax.random.normal(ks[13], (cout,), jnp.float32) * 0.1,
            "bns_v": jax.random.uniform(ks[14], (cout,), jnp.float32, 0.5, 1.5),
        })
    return p


if __name__ == "__main__":
    key = jax.random.PRNGKey(0)
    kx, kp = jax.random.split(key)

    N, Cin, Cout, H, W = 2, 4, 8, 16, 16   # projection shortcut exercised (Cin != Cout)
    x = jax.random.normal(kx, (N, Cin, H, W), jnp.float32)
    params = make_params(kp, Cin, Cout)

    fwd = jax.jit(residual_block_forward)
    out = jax.block_until_ready(fwd(x, params))
    ref = jax.block_until_ready(reference_forward(x, params))

    assert out.shape == (N, Cout, H, W), out.shape
    # bf16 MXU operands (f32 accumulation) -> relaxed tolerance per review note.
    np.testing.assert_allclose(np.asarray(out), np.asarray(ref), rtol=2e-2, atol=2e-2)
    print("KERNEL_OK")
</pallas_src>

<mosaic_0001>
module attributes {stable_mosaic.version = 11 : i64} {
  func.func @kernel(%arg0: memref<32x64xf32, #tpu.memory_space<vmem>>, %arg1: memref<3x64x128xbf16, #tpu.memory_space<vmem>>, %arg2: memref<3x128x128xbf16, #tpu.memory_space<vmem>>, %arg3: memref<64x128xbf16, #tpu.memory_space<vmem>>, %arg4: memref<3x128xf32, #tpu.memory_space<vmem>>, %arg5: memref<32x128xf32, #tpu.memory_space<vmem>>) attributes {dimension_semantics = [], scalar_prefetch = 0 : i64, scratch_operands = 0 : i64, tpu.core_type = #tpu.core_type<tc>} {
    %c0 = arith.constant 0 : index
    %c0_0 = arith.constant 0 : index
    %0 = vector.load %arg0[%c0, %c0_0] : memref<32x64xf32, #tpu.memory_space<vmem>>, vector<32x64xf32>
    %1 = tpu.iota {dimensions = array<i32: 0>} : vector<32x1xi32>
    %c16_i32 = arith.constant 16 : i32
    %c0_i32 = arith.constant 0 : i32
    %2 = arith.cmpi eq, %c16_i32, %c0_i32 : i32
    %c1_i32 = arith.constant 1 : i32
    %3 = arith.select %2, %c1_i32, %c16_i32 : i32
    %4 = vector.broadcast %3 : i32 to vector<32x1xi32>
    %5 = arith.remsi %1, %4 : vector<32x1xi32>
    %c0_i32_1 = arith.constant 0 : i32
    %6 = vector.broadcast %c0_i32_1 : i32 to vector<32x1xi32>
    %7 = arith.cmpi ne, %5, %6 : vector<32x1xi32>
    %c0_i32_2 = arith.constant 0 : i32
    %8 = vector.broadcast %c0_i32_2 : i32 to vector<32x1xi32>
    %9 = arith.cmpi slt, %5, %8 : vector<32x1xi32>
    %c0_i32_3 = arith.constant 0 : i32
    %10 = arith.cmpi slt, %3, %c0_i32_3 : i32
    %11 = vector.broadcast %10 : i1 to vector<32x1xi1>
    %12 = vector.broadcast %11 : vector<32x1xi1> to vector<32x1xi1>
    %13 = arith.xori %9, %12 : vector<32x1xi1>
    %14 = arith.andi %13, %7 : vector<32x1xi1>
    %15 = vector.broadcast %3 : i32 to vector<32x1xi32>
    %16 = arith.addi %5, %15 : vector<32x1xi32>
    %17 = arith.select %14, %16, %5 : vector<32x1xi1>, vector<32x1xi32>
    %c1_i32_4 = arith.constant 1 : i32
    %18 = vector.broadcast %c1_i32_4 : i32 to vector<32x1xi32>
    %19 = arith.cmpi sge, %17, %18 : vector<32x1xi32>
    %c15_i32 = arith.constant 15 : i32
    %20 = vector.broadcast %c15_i32 : i32 to vector<32x1xi32>
    %21 = arith.cmpi slt, %17, %20 : vector<32x1xi32>
    %c1_i32_5 = arith.constant 1 : i32
    %22 = tpu.dynamic_rotate %0 by %c1_i32_5 dim 0 : vector<32x64xf32>, i32 -> vector<32x64xf32>
    %cst = arith.constant 0.000000e+00 : f32
    %23 = vector.shape_cast %19 : vector<32x1xi1> to vector<32x1xi1>
    %24 = vector.broadcast %23 : vector<32x1xi1> to vector<32x64xi1>
    %25 = vector.broadcast %cst : f32 to vector<32x64xf32>
    %26 = arith.select %24, %22, %25 : vector<32x64xi1>, vector<32x64xf32>
    %27 = arith.truncf %26 : vector<32x64xf32> to vector<32x64xbf16>
    %c0_6 = arith.constant 0 : index
    %c0_7 = arith.constant 0 : index
    %c0_8 = arith.constant 0 : index
    %28 = vector.load %arg1[%c0_6, %c0_7, %c0_8] : memref<3x64x128xbf16, #tpu.memory_space<vmem>>, vector<1x64x128xbf16>
    %29 = vector.shape_cast %28 : vector<1x64x128xbf16> to vector<64x128xbf16>
    %cst_9 = arith.constant dense<0.000000e+00> : vector<32x128xf32>
    %30 = tpu.matmul %27, %29, %cst_9 {dimension_numbers = #tpu.dot_dimension_numbers<[1], [0], [0], [1], [0, 0, 1, 1], [], []>} : vector<32x64xbf16>, vector<64x128xbf16>, vector<32x128xf32> -> vector<32x128xf32>
    %31 = arith.truncf %0 : vector<32x64xf32> to vector<32x64xbf16>
    %c1 = arith.constant 1 : index
    %c0_10 = arith.constant 0 : index
    %c0_11 = arith.constant 0 : index
    %32 = vector.load %arg1[%c1, %c0_10, %c0_11] : memref<3x64x128xbf16, #tpu.memory_space<vmem>>, vector<1x64x128xbf16>
    %33 = vector.shape_cast %32 : vector<1x64x128xbf16> to vector<64x128xbf16>
    %cst_12 = arith.constant dense<0.000000e+00> : vector<32x128xf32>
    %34 = tpu.matmul %31, %33, %cst_12 {dimension_numbers = #tpu.dot_dimension_numbers<[1], [0], [0], [1], [0, 0, 1, 1], [], []>} : vector<32x64xbf16>, vector<64x128xbf16>, vector<32x128xf32> -> vector<32x128xf32>
    %35 = arith.addf %30, %34 : vector<32x128xf32>
    %c31_i32 = arith.constant 31 : i32
    %36 = tpu.dynamic_rotate %0 by %c31_i32 dim 0 : vector<32x64xf32>, i32 -> vector<32x64xf32>
    %cst_13 = arith.constant 0.000000e+00 : f32
    %37 = vector.shape_cast %21 : vector<32x1xi1> to vector<32x1xi1>
    %38 = vector.broadcast %37 : vector<32x1xi1> to vector<32x64xi1>
    %39 = vector.broadcast %cst_13 : f32 to vector<32x64xf32>
    %40 = arith.select %38, %36, %39 : vector<32x64xi1>, vector<32x64xf32>
    %41 = arith.truncf %40 : vector<32x64xf32> to vector<32x64xbf16>
    %c2 = arith.constant 2 : index
    %c0_14 = arith.constant 0 : index
    %c0_15 = arith.constant 0 : index
    %42 = vector.load %arg1[%c2, %c0_14, %c0_15] : memref<3x64x128xbf16, #tpu.memory_space<vmem>>, vector<1x64x128xbf16>
    %43 = vector.shape_cast %42 : vector<1x64x128xbf16> to vector<64x128xbf16>
    %cst_16 = arith.constant dense<0.000000e+00> : vector<32x128xf32>
    %44 = tpu.matmul %41, %43, %cst_16 {dimension_numbers = #tpu.dot_dimension_numbers<[1], [0], [0], [1], [0, 0, 1, 1], [], []>} : vector<32x64xbf16>, vector<64x128xbf16>, vector<32x128xf32> -> vector<32x128xf32>
    %45 = arith.addf %35, %44 : vector<32x128xf32>
    %c0_17 = arith.constant 0 : index
    %c0_18 = arith.constant 0 : index
    %46 = vector.load %arg4[%c0_17, %c0_18] : memref<3x128xf32, #tpu.memory_space<vmem>>, vector<1x128xf32>
    %47 = vector.broadcast %46 : vector<1x128xf32> to vector<32x128xf32>
    %48 = arith.addf %45, %47 : vector<32x128xf32>
    %cst_19 = arith.constant 0.000000e+00 : f32
    %49 = vector.broadcast %cst_19 : f32 to vector<32x128xf32>
    %50 = arith.maximumf %48, %49 : vector<32x128xf32>
    %51 = arith.truncf %0 : vector<32x64xf32> to vector<32x64xbf16>
    %c0_20 = arith.constant 0 : index
    %c0_21 = arith.constant 0 : index
    %52 = vector.load %arg3[%c0_20, %c0_21] : memref<64x128xbf16, #tpu.memory_space<vmem>>, vector<64x128xbf16>
    %cst_22 = arith.constant dense<0.000000e+00> : vector<32x128xf32>
    %53 = tpu.matmul %51, %52, %cst_22 {dimension_numbers = #tpu.dot_dimension_numbers<[1], [0], [0], [1], [0, 0, 1, 1], [], []>} : vector<32x64xbf16>, vector<64x128xbf16>, vector<32x128xf32> -> vector<32x128xf32>
    %c2_23 = arith.constant 2 : index
    %c0_24 = arith.constant 0 : index
    %54 = vector.load %arg4[%c2_23, %c0_24] : memref<3x128xf32, #tpu.memory_space<vmem>>, vector<1x128xf32>
    %55 = vector.broadcast %54 : vector<1x128xf32> to vector<32x128xf32>
    %56 = arith.addf %53, %55 : vector<32x128xf32>
    %c1_i32_25 = arith.constant 1 : i32
    %57 = tpu.dynamic_rotate %50 by %c1_i32_25 dim 0 : vector<32x128xf32>, i32 -> vector<32x128xf32>
    %cst_26 = arith.constant 0.000000e+00 : f32
    %58 = vector.shape_cast %19 : vector<32x1xi1> to vector<32x1xi1>
    %59 = vector.broadcast %58 : vector<32x1xi1> to vector<32x128xi1>
    %60 = vector.broadcast %cst_26 : f32 to vector<32x128xf32>
    %61 = arith.select %59, %57, %60 : vector<32x128xi1>, vector<32x128xf32>
    %62 = arith.truncf %61 : vector<32x128xf32> to vector<32x128xbf16>
    %c0_27 = arith.constant 0 : index
    %c0_28 = arith.constant 0 : index
    %c0_29 = arith.constant 0 : index
    %63 = vector.load %arg2[%c0_27, %c0_28, %c0_29] : memref<3x128x128xbf16, #tpu.memory_space<vmem>>, vector<1x128x128xbf16>
    %64 = vector.shape_cast %63 : vector<1x128x128xbf16> to vector<128x128xbf16>
    %cst_30 = arith.constant dense<0.000000e+00> : vector<32x128xf32>
    %65 = tpu.matmul %62, %64, %cst_30 {dimension_numbers = #tpu.dot_dimension_numbers<[1], [0], [0], [1], [0, 0, 1, 1], [], []>} : vector<32x128xbf16>, vector<128x128xbf16>, vector<32x128xf32> -> vector<32x128xf32>
    %66 = arith.truncf %50 : vector<32x128xf32> to vector<32x128xbf16>
    %c1_31 = arith.constant 1 : index
    %c0_32 = arith.constant 0 : index
    %c0_33 = arith.constant 0 : index
    %67 = vector.load %arg2[%c1_31, %c0_32, %c0_33] : memref<3x128x128xbf16, #tpu.memory_space<vmem>>, vector<1x128x128xbf16>
    %68 = vector.shape_cast %67 : vector<1x128x128xbf16> to vector<128x128xbf16>
    %cst_34 = arith.constant dense<0.000000e+00> : vector<32x128xf32>
    %69 = tpu.matmul %66, %68, %cst_34 {dimension_numbers = #tpu.dot_dimension_numbers<[1], [0], [0], [1], [0, 0, 1, 1], [], []>} : vector<32x128xbf16>, vector<128x128xbf16>, vector<32x128xf32> -> vector<32x128xf32>
    %70 = arith.addf %65, %69 : vector<32x128xf32>
    %c31_i32_35 = arith.constant 31 : i32
    %71 = tpu.dynamic_rotate %50 by %c31_i32_35 dim 0 : vector<32x128xf32>, i32 -> vector<32x128xf32>
    %cst_36 = arith.constant 0.000000e+00 : f32
    %72 = vector.shape_cast %21 : vector<32x1xi1> to vector<32x1xi1>
    %73 = vector.broadcast %72 : vector<32x1xi1> to vector<32x128xi1>
    %74 = vector.broadcast %cst_36 : f32 to vector<32x128xf32>
    %75 = arith.select %73, %71, %74 : vector<32x128xi1>, vector<32x128xf32>
    %76 = arith.truncf %75 : vector<32x128xf32> to vector<32x128xbf16>
    %c2_37 = arith.constant 2 : index
    %c0_38 = arith.constant 0 : index
    %c0_39 = arith.constant 0 : index
    %77 = vector.load %arg2[%c2_37, %c0_38, %c0_39] : memref<3x128x128xbf16, #tpu.memory_space<vmem>>, vector<1x128x128xbf16>
    %78 = vector.shape_cast %77 : vector<1x128x128xbf16> to vector<128x128xbf16>
    %cst_40 = arith.constant dense<0.000000e+00> : vector<32x128xf32>
    %79 = tpu.matmul %76, %78, %cst_40 {dimension_numbers = #tpu.dot_dimension_numbers<[1], [0], [0], [1], [0, 0, 1, 1], [], []>} : vector<32x128xbf16>, vector<128x128xbf16>, vector<32x128xf32> -> vector<32x128xf32>
    %80 = arith.addf %70, %79 : vector<32x128xf32>
    %c1_41 = arith.constant 1 : index
    %c0_42 = arith.constant 0 : index
    %81 = vector.load %arg4[%c1_41, %c0_42] : memref<3x128xf32, #tpu.memory_space<vmem>>, vector<1x128xf32>
    %82 = vector.broadcast %81 : vector<1x128xf32> to vector<32x128xf32>
    %83 = arith.addf %80, %82 : vector<32x128xf32>
    %84 = arith.addf %83, %56 : vector<32x128xf32>
    %cst_43 = arith.constant 0.000000e+00 : f32
    %85 = vector.broadcast %cst_43 : f32 to vector<32x128xf32>
    %86 = arith.maximumf %84, %85 : vector<32x128xf32>
    %c0_44 = arith.constant 0 : index
    %c0_45 = arith.constant 0 : index
    %87 = vector.load %arg5[%c0_44, %c0_45] : memref<32x128xf32, #tpu.memory_space<vmem>>, vector<32x128xf32>
    tpu.vector_store %arg5[%c0_44, %c0_45], %86 {strides = array<i32>} : memref<32x128xf32, #tpu.memory_space<vmem>>, vector<32x128xf32>,
    return
  }
}

</mosaic_0001>

<bundles_post_ra>
// kernel: tile.18
= control target key start
LH: loop header
LB: loop body
LE: loop exit
PB: predicated region body
PF: predicated region fallthrough
CT: control target
= control target key end

     0   :  { %s28_s0 = inlined_call_operand.vmem [shape: f32[8], index: 0, kind: input, shape index: {}]   ;;  %s29_s1 = inlined_call_operand.vmem [shape: f32[16,8], index: 1, kind: output, shape index: {}]  }
   0x1   :  { %v4_v0 = vld [vmem:[%s28_s0] ss:$0 sm:$0xff] }
   0x2   :  { %5 = vst [vmem:[%s29_s1] sm:$0xff] %v4_v0  ;;  %8 = vst [vmem:[%s29_s1 + $0x8] sm:$0xff] %v4_v0 }

// kernel: tile.27
= control target key start
LH: loop header
LB: loop body
LE: loop exit
PB: predicated region body
PF: predicated region fallthrough
CT: control target
= control target key end

     0   :  { %s131_s10 = smov 120   ;;  %s132_s11 = smov 104   ;;  %vm3_vm0 = vcmask 64512   ;;  %vm9_vm1 = vcmask 1048512   ;;  %vm15_vm2 = vcmask 982912   ;;  %vm21_vm3 = vcmask 917312   ;;  %s207_s0 = inlined_call_operand.vmem [shape: f32[16,8], index: 0, kind: input, shape index: {}]   ;;  %s208_s1 = inlined_call_operand.vmem [shape: f32[1,128], index: 1, kind: output, shape index: {}]  }
   0x1   :  { %v101_v0 = vld [vmem:[%s207_s0 + $0xf] sm:$0x1]   ;;  %v103_v1 = vld [vmem:[%s207_s0 + $0xd] sm:$0x1]   ;;  %v102_v2 = vld [vmem:[%s207_s0 + $0xe] sm:$0x1]  }
   0x2   :  { %7 = vrot.lane.b32.xlu0 %v101_v0, %s131_s10  ;;  %19 = vrot.lane.b32.xlu1 %v103_v1, %s132_s11  ;;  %v104_v3 = vld [vmem:[%s207_s0 + $0xc] sm:$0x1]   ;;  %s133_s16 = smov 112   ;;  %s134_s17 = smov 96   ;;  %v105_v4 = vld [vmem:[%s207_s0 + $0xb] sm:$0x1]  }
   0x3   :  { %v106_v5 = vld [vmem:[%s207_s0 + $0xa] sm:$0x1]   ;;  %v2_v6 = vld [vmem:[%s207_s0] sm:$0x1]   ;;  %s135_s24 = smov 88   ;;  %s136_s25 = smov 80  }
   0x4   :  { %4 = vst.msk [vmem:[#allocation0] sm:$0x1] %vm3_vm0, %v2_v6   ;;  %v107_v7 = vld [vmem:[%s207_s0 + $0x9] sm:$0x1]   ;;  %v108_v8 = vld [vmem:[%s207_s0 + $0x8] sm:$0x1]  }
   0x5   :  { %s137_s30 = smov 72   ;;  %s138_s2 = smov 64   ;;  %v109_v9 = vld [vmem:[%s207_s0 + $0x7] sm:$0x1]   ;;  %v110_v10 = vld [vmem:[%s207_s0 + $0x6] sm:$0x1]  }
   0x6   :  { %13 = vrot.lane.b32.xlu0 %v102_v2, %s133_s16  ;;  %25 = vrot.lane.b32.xlu1 %v104_v3, %s134_s17  ;;  %s139_s7 = smov 56   ;;  %s140_s8 = smov 48   ;;  %v111_v11 = vld [vmem:[%s207_s0 + $0x5] sm:$0x1]   ;;  %v112_v12 = vld [vmem:[%s207_s0 + $0x4] sm:$0x1]  }
   0x7   :  { %s141_s13 = smov 40   ;;  %s142_s14 = smov 32   ;;  %v113_v13 = vld [vmem:[%s207_s0 + $0x3] sm:$0x1]   ;;  %v114_v14 = vld [vmem:[%s207_s0 + $0x2] sm:$0x1]  }
   0x8   :  { %s143_s19 = smov 24   ;;  %s144_s20 = smov 16   ;;  %v115_v15 = vld [vmem:[%s207_s0 + $0x1] sm:$0x1]   ;;  %vm27_vm4 = vcmask 851712   ;;  %vm33_vm5 = vcmask 786112  }
   0x9   :  { %s145_s0 = smov 8   ;;  %vm39_vm6 = vcmask 720512   ;;  %vm45_vm7 = vcmask 654912   ;;  %vm51_vm8 = vcmask 589312   ;;  %vm57_vm9 = vcmask 523712  }
   0xa   :  { %31 = vrot.lane.b32.xlu0 %v105_v4, %s135_s24  ;;  %37 = vrot.lane.b32.xlu1 %v106_v5, %s136_s25  ;;  %vm63_vm10 = vcmask 458112   ;;  %vm69_vm11 = vcmask 392512   ;;  %vm75_vm12 = vcmask 326912   ;;  %vm81_vm13 = vcmask 261312  }
   0xb   :  { %vm87_vm14 = vcmask 195712   ;;  %vm93_vm15 = vcmask 130112  }
   0xe   :  { %43 = vrot.lane.b32.xlu0 %v107_v7, %s137_s30  ;;  %49 = vrot.lane.b32.xlu1 %v108_v8, %s138_s2 }
  0x12   :  { %55 = vrot.lane.b32.xlu0 %v109_v9, %s139_s7  ;;  %61 = vrot.lane.b32.xlu1 %v110_v10, %s140_s8 }
  0x16   :  { %67 = vrot.lane.b32.xlu0 %v111_v11, %s141_s13  ;;  %73 = vrot.lane.b32.xlu1 %v112_v12, %s142_s14 }
  0x1a   :  { %79 = vrot.lane.b32.xlu0 %v113_v13, %s143_s19  ;;  %85 = vrot.lane.b32.xlu1 %v114_v14, %s144_s20 }
  0x1e   :  { %91 = vrot.lane.b32.xlu0 %v115_v15, %s145_s0 }
  0x74   :  { %v8_v16 = vpop.permute.xlu0 %7   ;;  %v20_v17 = vpop.permute.xlu1 %19  }
  0x75   :  { %10 = vst.msk [vmem:[#allocation0] sm:$0x1] %vm9_vm1, %v8_v16  }
  0x78   :  { %v14_v18 = vpop.permute.xlu0 %13   ;;  %v26_v19 = vpop.permute.xlu1 %25  }
  0x79   :  { %16 = vst.msk [vmem:[#allocation0] sm:$0x1] %vm15_vm2, %v14_v18  }
  0x7a   :  { %22 = vst.msk [vmem:[#allocation0] sm:$0x1] %vm21_vm3, %v20_v17  }
  0x7b   :  { %28 = vst.msk [vmem:[#allocation0] sm:$0x1] %vm27_vm4, %v26_v19  }
  0x7c   :  { %v32_v20 = vpop.permute.xlu0 %31   ;;  %v38_v21 = vpop.permute.xlu1 %37  }
  0x7d   :  { %34 = vst.msk [vmem:[#allocation0] sm:$0x1] %vm33_vm5, %v32_v20  }
  0x7e   :  { %40 = vst.msk [vmem:[#allocation0] sm:$0x1] %vm39_vm6, %v38_v21  }
  0x80   :  { %v44_v22 = vpop.permute.xlu0 %43   ;;  %v50_v23 = vpop.permute.xlu1 %49  }
  0x81   :  { %46 = vst.msk [vmem:[#allocation0] sm:$0x1] %vm45_vm7, %v44_v22  }
  0x82   :  { %52 = vst.msk [vmem:[#allocation0] sm:$0x1] %vm51_vm8, %v50_v23  }
  0x84   :  { %v56_v24 = vpop.permute.xlu0 %55   ;;  %v62_v25 = vpop.permute.xlu1 %61  }
  0x85   :  { %58 = vst.msk [vmem:[#allocation0] sm:$0x1] %vm57_vm9, %v56_v24  }
  0x86   :  { %64 = vst.msk [vmem:[#allocation0] sm:$0x1] %vm63_vm10, %v62_v25  }
  0x88   :  { %v68_v26 = vpop.permute.xlu0 %67   ;;  %v74_v27 = vpop.permute.xlu1 %73  }
  0x89   :  { %70 = vst.msk [vmem:[#allocation0] sm:$0x1] %vm69_vm11, %v68_v26  }
  0x8a   :  { %76 = vst.msk [vmem:[#allocation0] sm:$0x1] %vm75_vm12, %v74_v27  }
  0x8c   :  { %v80_v28 = vpop.permute.xlu0 %79   ;;  %v86_v29 = vpop.permute.xlu1 %85  }
  0x8d   :  { %82 = vst.msk [vmem:[#allocation0] sm:$0x1] %vm81_vm13, %v80_v28  }
  0x8e   :  { %88 = vst.msk [vmem:[#allocation0] sm:$0x1] %vm87_vm14, %v86_v29  }
  0x90   :  { %v92_v30 = vpop.permute.xlu0 %91  }
  0x91   :  { %94 = vst.msk [vmem:[#allocation0] sm:$0x1] %vm93_vm15, %v92_v30  }
  0x98   :  { %v98_v31 = vld [vmem:[#allocation0] sm:$0x1] }
  0x99   :  { %100 = vst [vmem:[%s208_s1] sm:$0x1] %v98_v31 }

// kernel: residual_block_forward.1
= control target key start
LH: loop header
LB: loop body
LE: loop exit
PB: predicated region body
PF: predicated region fallthrough
CT: control target
= control target key end

     0   :  { %v25_v0 = vlaneseq  ;;  %vm152_vm0 = vcmask 523264   ;;  %vm1243_vm7 = vmmov 1   ;;  %s1543_s1 = inlined_call_operand.vmem [shape: bf16[3,64,128], index: 1, kind: input, shape index: {}]   ;;  %s1544_s0 = inlined_call_operand.vmem [shape: f32[32,64], index: 0, kind: input, shape index: {}]   ;;  %s1545_s3 = inlined_call_operand.vmem [shape: bf16[64,128], index: 3, kind: input, shape index: {}]   ;;  %s1546_s2 = inlined_call_operand.vmem [shape: bf16[3,128,128], index: 2, kind: input, shape index: {}]   ;;  %s1547_s4 = inlined_call_operand.vmem [shape: f32[3,128], index: 4, kind: input, shape index: {}]   ;;  %s1548_s5 = inlined_call_operand.vmem [shape: f32[32,128], index: 5, kind: output, shape index: {}]  }
   0x1   :  { %v1203_v1 = vld [vmem:[%s1543_s1 + $0x20] sm:$0xff]   ;;  %v1204_v2 = vld [vmem:[%s1543_s1 + $0x28] sm:$0xff]   ;;  %v1205_v4 = vld [vmem:[%s1543_s1 + $0x30] sm:$0xff]  }
   0x2   :  { %v1280_v3 = vshrl.u32 %v25_v0, 7  ;;  %1066 = vmatprep.subr.bf16.mxu0 %v1203_v1  ;;  %v1288_v5 = vld [vmem:[%s1544_s0] sm:$0xff]  ;;  %v1293_v6 = vld [vmem:[%s1544_s0 + $0x8] sm:$0xff]  ;;  %v1302_v10 = vld [vmem:[%s1544_s0 + $0x18] sm:$0xff] }
   0x3   :  { %1067 = vmatpush3.bf16.msra.mxu0 %v1203_v1  ;;  %v86_v7 = vrot.slane %v1288_v5, 7  ;;  %v117_v8 = vpack.c.bf16 %v1293_v6, %v1288_v5  ;;  %v89_v11 = vrot.slane %v1302_v10, 7  ;;  %v1206_v12 = vld [vmem:[%s1543_s1 + $0x38] sm:$0xff]   ;;  %v87_v13 = vrot.slane %v1293_v6, 7  ;;  %v1321_v16 = vld [vmem:[%s1544_s0 + $0x10] sm:$0xff]  ;;  %v1207_v17 = vld [vmem:[%s1543_s1] sm:$0xff]  }
   0x4   :  { %1068 = vmatprep.subr.bf16.mxu0 %v1204_v2  ;;  %v34_v9 = vand.u32 15, %v1280_v3  ;;  %vm90_vm1 = vcmp.lt.s32.totalorder %v1280_v3, 1  ;;  %v118_v20 = vpack.c.bf16 %v1302_v10, %v1321_v16  ;;  %v1208_v21 = vld [vmem:[%s1543_s1 + $0x8] sm:$0xff]   ;;  %v28_v23 = vadd.s32 16, %v1280_v3  ;;  %v1215_v24 = vld [vmem:[%s1545_s3] sm:$0xff]   ;;  %v1209_v29 = vld [vmem:[%s1543_s1 + $0x10] sm:$0xff]  }
   0x5   :  { %1074 = vmatprep.mubr.msk.bf16.mxu0 %vm152_vm0, %v117_v8  ;;  %1110 = vmatprep.mubr.msk.bf16.mxu1 %vm152_vm0, %v117_v8  ;;  %v94_v15 = vsel %vm90_vm1, %v89_v11, %v86_v7  ;;  %v93_v18 = vsel %vm90_vm1, %v86_v7, %v87_v13  ;;  %v1216_v25 = vld [vmem:[%s1545_s3 + $0x8] sm:$0xff]   ;;  %v27_v26 = vadd.s32 8, %v1280_v3  ;;  %v288_v27 = vrot.slane %v1293_v6, 1  ;;  %v1217_v31 = vld [vmem:[%s1545_s3 + $0x10] sm:$0xff]   ;;  %v1218_v35 = vld [vmem:[%s1545_s3 + $0x18] sm:$0xff]  }
   0x6   :  { %vm1312_vm2 = vcmp.ge.s32.totalorder %v34_v9, 1  ;;  %1102 = vmatprep.subr.bf16.mxu1 %v1215_v24  ;;  %v88_v28 = vrot.slane %v1321_v16, 7  ;;  %v48_v30 = vand.u32 15, %v28_v23  ;;  %v289_v32 = vrot.slane %v1321_v16, 1  ;;  %v1210_v36 = vld [vmem:[%s1543_s1 + $0x18] sm:$0xff]   ;;  %v1220_v44 = vld [vmem:[%s1546_s2] sm:$0xff]  }
   0x7   :  { %1069 = vmatpush3.bf16.msra.mxu0 %v1204_v2  ;;  %v103_v19 = vsel %vm1312_vm2, %v94_v15, 0.0  ;;  %1103 = vmatpush3.bf16.msra.mxu1 %v1215_v24  ;;  %v41_v33 = vand.u32 15, %v27_v26  ;;  %vm291_vm3 = vcmp.lt.s32.totalorder %v1280_v3, 7  ;;  %v287_v34 = vrot.slane %v1288_v5, 1  ;;  %v1211_v45 = vld [vmem:[%s1543_s1 + $0x40] sm:$0xff]   ;;  %v1212_v51 = vld [vmem:[%s1543_s1 + $0x48] sm:$0xff]   ;;  %vm975_vm8 = vmpackc.low %vm1243_vm7, %vm1312_vm2 }
   0x8   :  { %1070 = vmatprep.subr.bf16.mxu0 %v1205_v4  ;;  %v107_v22 = vpack.c.bf16 %v93_v18, %v103_v19  ;;  %1104 = vmatprep.subr.bf16.mxu1 %v1216_v25  ;;  %vm1362_vm4 = vcmp.ge.s32.totalorder %v48_v30, 1  ;;  %v92_v38 = vsel %vm90_vm1, %v87_v13, %v88_v28  ;;  %v293_v40 = vsel %vm291_vm3, %v288_v27, %v289_v32  ;;  %v1222_v52 = vld [vmem:[%s1546_s2 + $0x8] sm:$0xff]   ;;  %v1224_v54 = vld [vmem:[%s1546_s2 + $0x10] sm:$0xff]   ;;  %v1226_v56 = vld [vmem:[%s1546_s2 + $0x18] sm:$0xff]  }
   0x9   :  { %vm1368_vm5 = vcmp.lt.s32.totalorder %v41_v33, 15  ;;  %v29_v41 = vadd.s32 24, %v1280_v3  ;;  %v91_v42 = vsel %vm90_vm1, %v88_v28, %v89_v11  ;;  %v105_v43 = vsel %vm1362_vm4, %v92_v38, 0.0  ;;  %v1213_v55 = vld [vmem:[%s1543_s1 + $0x50] sm:$0xff]   ;;  %v1214_v57 = vld [vmem:[%s1543_s1 + $0x58] sm:$0xff]   ;;  %v1228_v62 = vld [vmem:[%s1546_s2 + $0x20] sm:$0xff]  }
   0xa   :  { %v294_v46 = vsel %vm291_vm3, %v287_v34, %v288_v27  ;;  %v305_v47 = vsel %vm1368_vm5, %v293_v40, 0.0  ;;  %v290_v48 = vrot.slane %v1302_v10, 1  ;;  %v108_v50 = vpack.c.bf16 %v91_v42, %v105_v43  ;;  %v1219_v63 = vld [vmem:[%s1546_s2 + $0x40] sm:$0xff]   ;;  %v1221_v1 = vld [vmem:[%s1546_s2 + $0x48] sm:$0xff]   ;;  %v1223_v2 = vld [vmem:[%s1546_s2 + $0x50] sm:$0xff]  }
   0xb   :  { %1071 = vmatpush3.bf16.msra.mxu0 %v1205_v4  ;;  %1105 = vmatpush3.bf16.msra.mxu1 %v1216_v25  ;;  %v55_v49 = vand.u32 15, %v29_v41  ;;  %v308_v53 = vpack.c.bf16 %v305_v47, %v294_v46  ;;  %v1225_v4 = vld [vmem:[%s1546_s2 + $0x58] sm:$0xff]   ;;  %v1227_v5 = vld [vmem:[%s1546_s2 + $0x60] sm:$0xff]   ;;  %v1229_v6 = vld [vmem:[%s1546_s2 + $0x68] sm:$0xff]  }
   0xc   :  { %1072 = vmatprep.subr.bf16.mxu0 %v1206_v12  ;;  %1106 = vmatprep.subr.bf16.mxu1 %v1217_v31  ;;  %v295_v59 = vsel %vm291_vm3, %v290_v48, %v287_v34  ;;  %v292_v60 = vsel %vm291_vm3, %v289_v32, %v290_v48  ;;  %v1230_v7 = vld [vmem:[%s1546_s2 + $0x28] sm:$0xff]   ;;  %v1231_v8 = vld [vmem:[%s1546_s2 + $0x70] sm:$0xff]   ;;  %v1233_v10 = vld [vmem:[%s1546_s2 + $0x78] sm:$0xff]  }
   0xd   :  { %vm1411_vm6 = vcmp.lt.s32.totalorder %v55_v49, 15  ;;  %v1232_v9 = vld [vmem:[%s1546_s2 + $0x30] sm:$0xff]   ;;  %v1234_v11 = vld [vmem:[%s1546_s2 + $0x38] sm:$0xff]   ;;  %v935_v18 = vld [vmem:[%s1547_s4] ss:$0 sm:$0xff] }
   0xe   :  { %v307_v61 = vsel %vm1411_vm6, %v295_v59, 0.0  ;;  %vm978_vm9 = vmpackc.low %vm1243_vm7, %vm1362_vm4  ;;  %v1237_v37 = vld [vmem:[%s1546_s2 + $0x90] sm:$0xff]   ;;  %v1238_v3 = vld [vmem:[%s1546_s2 + $0x98] sm:$0xff]  }
   0xf   :  { %1073 = vmatpush3.bf16.msra.mxu0 %v1206_v12  ;;  %1107 = vmatpush3.bf16.msra.mxu1 %v1217_v31  ;;  %v309_v0 = vpack.c.bf16 %v307_v61, %v292_v60  ;;  %v1235_v12 = vld [vmem:[%s1546_s2 + $0x80] sm:$0xff]   ;;  %vm1005_vm10 = vmpackc.low %vm1368_vm5, %vm1243_vm7 }
  0x10   :  { %1078 = vmatprep.subr.bf16.mxu0 %v1207_v17  ;;  %1108 = vmatprep.subr.bf16.mxu1 %v1218_v35  ;;  %v1239_v39 = vld [vmem:[%s1546_s2 + $0xa0] sm:$0xff]   ;;  %vm1008_vm11 = vmpackc.low %vm1411_vm6, %vm1243_vm7 }
  0x11   :  { %v936_v59 = vld [vmem:[%s1547_s4 + $0x2] ss:$0 sm:$0xff] }
  0x12   :  { %1075 = vmatmul.mubr.msk.bf16.vlgmr.msra.gmra.mrb[0].mxu0 %vm152_vm0, %v118_v20 }
  0x13   :  { %1079 = vmatpush3.bf16.msra.mxu0 %v1207_v17  ;;  %1086 = vmatprep.mubr.msk.bf16.mxu0 %vm152_vm0, %v107_v22 }
  0x14   :  { %1080 = vmatprep.subr.bf16.mxu0 %v1208_v21  ;;  %1109 = vmatpush3.bf16.msra.mxu1 %v1218_v35 }
  0x15   :  { %1134 = vmatprep.subr.bf16.mxu1 %v1220_v44 }
  0x17   :  { %1081 = vmatpush3.bf16.msra.mxu0 %v1208_v21  ;;  %1111 = vmatmul.mubr.msk.bf16.vlgmr.msra.gmra.mrb[0].mxu1 %vm152_vm0, %v118_v20 }
  0x18   :  { %1082 = vmatprep.subr.bf16.mxu0 %v1209_v29  ;;  %1135 = vmatpush3.bf16.msra.mxu1 %v1220_v44 }
  0x19   :  { %1136 = vmatprep.subr.bf16.mxu1 %v1222_v52 }
  0x1b   :  { %1083 = vmatpush3.bf16.msra.mxu0 %v1209_v29 }
  0x1c   :  { %1084 = vmatprep.subr.bf16.mxu0 %v1210_v36  ;;  %1137 = vmatpush3.bf16.msra.mxu1 %v1222_v52 }
  0x1d   :  { %1138 = vmatprep.subr.bf16.mxu1 %v1224_v54 }
  0x1f   :  { %1085 = vmatpush3.bf16.msra.mxu0 %v1210_v36 }
  0x20   :  { %1090 = vmatprep.subr.bf16.mxu0 %v1211_v45  ;;  %1139 = vmatpush3.bf16.msra.mxu1 %v1224_v54  ;;  %v1236_v54 = vld [vmem:[%s1546_s2 + $0x88] sm:$0xff]  }
  0x21   :  { %1140 = vmatprep.subr.bf16.mxu1 %v1226_v56 }
  0x22   :  { %1087 = vmatmul.mubr.msk.bf16.vlgmr.msra.gmra.mrb[0].mxu0 %vm152_vm0, %v108_v50 }
  0x23   :  { %1091 = vmatpush3.bf16.msra.mxu0 %v1211_v45  ;;  %1098 = vmatprep.mubr.msk.bf16.mxu0 %vm152_vm0, %v308_v53 }
  0x24   :  { %1092 = vmatprep.subr.bf16.mxu0 %v1212_v51  ;;  %1141 = vmatpush3.bf16.msra.mxu1 %v1226_v56  ;;  %v1241_v56 = vld [vmem:[%s1546_s2 + $0xb0] sm:$0xff]  }
  0x25   :  { %1142 = vmatprep.subr.bf16.mxu1 %v1228_v62 }
  0x27   :  { %1093 = vmatpush3.bf16.msra.mxu0 %v1212_v51 }
  0x28   :  { %1094 = vmatprep.subr.bf16.mxu0 %v1213_v55  ;;  %1143 = vmatpush3.bf16.msra.mxu1 %v1228_v62 }
  0x29   :  { %1144 = vmatprep.subr.bf16.mxu1 %v1230_v7 }
  0x2b   :  { %1095 = vmatpush3.bf16.msra.mxu0 %v1213_v55  ;;  %v1240_v55 = vld [vmem:[%s1546_s2 + $0xa8] sm:$0xff]  }
  0x2c   :  { %1096 = vmatprep.subr.bf16.mxu0 %v1214_v57  ;;  %1145 = vmatpush3.bf16.msra.mxu1 %v1230_v7 }
  0x2d   :  { %1146 = vmatprep.subr.bf16.mxu1 %v1232_v9 }
  0x2f   :  { %1097 = vmatpush3.bf16.msra.mxu0 %v1214_v57  ;;  %v1242_v57 = vld [vmem:[%s1546_s2 + $0xb8] sm:$0xff]  }
  0x30   :  { %1114 = vmatprep.subr.bf16.mxu0 %v1219_v63  ;;  %1147 = vmatpush3.bf16.msra.mxu1 %v1232_v9  ;;  %v1011_v9 = vld [vmem:[%s1547_s4 + $0x1] ss:$0 sm:$0xff] }
  0x31   :  { %1148 = vmatprep.subr.bf16.mxu1 %v1234_v11 }
  0x32   :  { %1099 = vmatmul.mubr.msk.bf16.vlgmr.msra.gmra.mrb[0].mxu0 %vm152_vm0, %v309_v0 }
  0x33   :  { %1115 = vmatpush3.bf16.msra.mxu0 %v1219_v63 }
  0x34   :  { %1116 = vmatprep.subr.bf16.mxu0 %v1221_v1  ;;  %1149 = vmatpush3.bf16.msra.mxu1 %v1234_v11 }
  0x35   :  { %1154 = vmatprep.subr.bf16.mxu1 %v1235_v12 }
  0x37   :  { %1117 = vmatpush3.bf16.msra.mxu0 %v1221_v1 }
  0x38   :  { %1118 = vmatprep.subr.bf16.mxu0 %v1223_v2 }
  0x3b   :  { %1119 = vmatpush3.bf16.msra.mxu0 %v1223_v2 }
  0x3c   :  { %1120 = vmatprep.subr.bf16.mxu0 %v1225_v4 }
  0x3f   :  { %1121 = vmatpush3.bf16.msra.mxu0 %v1225_v4 }
  0x40   :  { %1122 = vmatprep.subr.bf16.mxu0 %v1227_v5 }
  0x43   :  { %1123 = vmatpush3.bf16.msra.mxu0 %v1227_v5 }
  0x44   :  { %1124 = vmatprep.subr.bf16.mxu0 %v1229_v6 }
  0x47   :  { %1125 = vmatpush3.bf16.msra.mxu0 %v1229_v6 }
  0x48   :  { %1126 = vmatprep.subr.bf16.mxu0 %v1231_v8 }
  0x4b   :  { %1127 = vmatpush3.bf16.msra.mxu0 %v1231_v8 }
  0x4c   :  { %1128 = vmatprep.subr.bf16.mxu0 %v1233_v10 }
  0x4f   :  { %1129 = vmatpush3.bf16.msra.mxu0 %v1233_v10 }
  0xea   :  { %v1461_v13 = vpop.f32.mrb[0].mxu1 }
  0xeb   :  { %v1463_v15 = vpop.f32.mrb[1].mxu1  ;;  %v495_v60 = vadd.f32 %v1461_v13, %v936_v59 }
  0xec   :  { %v1465_v16 = vpop.f32.mrb[2].mxu1  ;;  %v487_v61 = vadd.f32 %v936_v59, %v1463_v15 }
  0xed   :  { %v1467_v17 = vpop.f32.mrb[3].mxu1  ;;  %v498_v63 = vadd.f32 %v1465_v16, %v936_v59 }
  0xee   :  { %v490_v2 = vadd.f32 %v936_v59, %v1467_v17 }
 0x105   :  { %v1100_v19 = vpop.f32.mrb[0].mxu0 }
 0x106   :  { %v409_v20 = vadd.f32 %v1100_v19, %v935_v18  ;;  %v383_v21 = vpop.f32.mrb[1].mxu0 }
 0x107   :  { %v407_v22 = vadd.f32 %v935_v18, %v383_v21  ;;  %v1101_v23 = vpop.f32.mrb[2].mxu0 }
 0x108   :  { %v413_v24 = vmax.f32 %v409_v20, 0.0  ;;  %v410_v25 = vadd.f32 %v1101_v23, %v935_v18  ;;  %v386_v26 = vpop.f32.mrb[3].mxu0 }
 0x109   :  { %v411_v27 = vmax.f32 %v407_v22, 0.0  ;;  %v408_v28 = vadd.f32 %v935_v18, %v386_v26 }
 0x10a   :  { %v414_v29 = vmax.f32 %v410_v25, 0.0  ;;  %v503_v30 = vrot.slane %v413_v24, 7  ;;  %v746_v34 = vrot.slane %v413_v24, 1 }
 0x10b   :  { %v501_v31 = vrot.slane %v411_v27, 7  ;;  %v744_v32 = vrot.slane %v411_v27, 1  ;;  %v412_v33 = vmax.f32 %v408_v28, 0.0 }
 0x10c   :  { %v504_v35 = vrot.slane %v414_v29, 7  ;;  %v532_v36 = vpack.c.bf16 %v414_v29, %v413_v24  ;;  %v747_v38 = vrot.slane %v414_v29, 1 }
 0x10d   :  { %v502_v40 = vrot.slane %v412_v33, 7  ;;  %v745_v41 = vrot.slane %v412_v33, 1  ;;  %v531_v42 = vpack.c.bf16 %v412_v33, %v411_v27 }
 0x10e   :  { %v505_v43 = vsel %vm90_vm1, %v503_v30, %v504_v35  ;;  %v748_v44 = vsel %vm291_vm3, %v746_v34, %v747_v38  ;;  %v751_v45 = vsel %vm291_vm3, %v747_v38, %v744_v32  ;;  %v508_v46 = vsel %vm90_vm1, %v504_v35, %v501_v31 }
 0x10f   :  { %v1009_v47 = vpack.c.bf16 %v751_v45, %v748_v44  ;;  %v506_v48 = vsel %vm90_vm1, %v502_v40, %v503_v30  ;;  %1130 = vmatprep.mubr.bf16.mxu0 %v531_v42  ;;  %v507_v49 = vsel %vm90_vm1, %v501_v31, %v502_v40  ;;  %v749_v50 = vsel %vm291_vm3, %v745_v41, %v746_v34 }
 0x110   :  { %v979_v51 = vpack.c.bf16 %v505_v43, %v506_v48  ;;  %1131 = vmatmul.mubr.bf16.vlgmr.msra.gmra.mrb[4].mxu0 %v532_v36  ;;  %v976_v52 = vpack.c.bf16 %v507_v49, %v508_v46  ;;  %v750_v53 = vsel %vm291_vm3, %v744_v32, %v745_v41 }
 0x111   :  { %v1006_v14 = vpack.c.bf16 %v749_v50, %v750_v53 }
 0x112   :  { %1150 = vmatprep.mubr.msk.bf16.mxu1 %vm975_vm8, %v976_v52 }
 0x113   :  { %1151 = vmatmul.mubr.msk.bf16.vlgmr.msra.gmra.mrb[4].mxu1 %vm978_vm9, %v979_v51 }
 0x114   :  { %1155 = vmatpush3.bf16.msra.mxu1 %v1235_v12  ;;  %1170 = vmatprep.mubr.msk.bf16.mxu1 %vm1005_vm10, %v1006_v14 }
 0x115   :  { %1156 = vmatprep.subr.bf16.mxu1 %v1236_v54 }
 0x118   :  { %1157 = vmatpush3.bf16.msra.mxu1 %v1236_v54 }
 0x119   :  { %1158 = vmatprep.subr.bf16.mxu1 %v1237_v37 }
 0x11c   :  { %1159 = vmatpush3.bf16.msra.mxu1 %v1237_v37 }
 0x11d   :  { %1160 = vmatprep.subr.bf16.mxu1 %v1238_v3 }
 0x120   :  { %1161 = vmatpush3.bf16.msra.mxu1 %v1238_v3 }
 0x121   :  { %1162 = vmatprep.subr.bf16.mxu1 %v1239_v39 }
 0x124   :  { %1163 = vmatpush3.bf16.msra.mxu1 %v1239_v39 }
 0x125   :  { %1164 = vmatprep.subr.bf16.mxu1 %v1240_v55 }
 0x128   :  { %1165 = vmatpush3.bf16.msra.mxu1 %v1240_v55 }
 0x129   :  { %1166 = vmatprep.subr.bf16.mxu1 %v1241_v56 }
 0x12c   :  { %1167 = vmatpush3.bf16.msra.mxu1 %v1241_v56 }
 0x12d   :  { %1168 = vmatprep.subr.bf16.mxu1 %v1242_v57 }
 0x130   :  { %1169 = vmatpush3.bf16.msra.mxu1 %v1242_v57 }
 0x133   :  { %1171 = vmatmul.mubr.msk.bf16.vlgmr.msra.gmra.mrb[4].mxu1 %vm1008_vm11, %v1009_v47 }
 0x1e3   :  { %v1132_v62 = vpop.f32.mrb[4].mxu0 }
 0x1e4   :  { %v1175_v0 = vadd.f32 %v1132_v62, %v495_v60  ;;  %v632_v1 = vpop.f32.mrb[5].mxu0 }
 0x1e5   :  { %v1179_v4 = vadd.f32 %v632_v1, %v487_v61  ;;  %v1133_v5 = vpop.f32.mrb[6].mxu0 }
 0x1e6   :  { %v1183_v58 = vadd.f32 %v1133_v5, %v498_v63  ;;  %v635_v6 = vpop.f32.mrb[7].mxu0 }
 0x1e7   :  { %v1187_v7 = vadd.f32 %v635_v6, %v490_v2 }
 0x206   :  { %v1172_v8 = vpop.f32.mrb[4].mxu1 }
 0x207   :  { %v1176_v10 = vadd.f32 %v1175_v0, %v1172_v8  ;;  %v857_v11 = vpop.f32.mrb[5].mxu1 }
 0x208   :  { %v1180_v12 = vadd.f32 %v1179_v4, %v857_v11  ;;  %v1173_v13 = vpop.f32.mrb[6].mxu1 }
 0x209   :  { %v1177_v15 = vadd.f32 %v1176_v10, %v1011_v9  ;;  %v1184_v16 = vadd.f32 %v1183_v58, %v1173_v13  ;;  %v860_v18 = vpop.f32.mrb[7].mxu1 }
 0x20a   :  { %v1181_v19 = vadd.f32 %v1180_v12, %v1011_v9  ;;  %v1188_v20 = vadd.f32 %v1187_v7, %v860_v18 }
 0x20b   :  { %v891_v17 = vmax.f32 %v1177_v15, 0.0  ;;  %v1185_v21 = vadd.f32 %v1184_v16, %v1011_v9 }
 0x20c   :  { %v889_v22 = vmax.f32 %v1181_v19, 0.0  ;;  %v1189_v23 = vadd.f32 %v1188_v20, %v1011_v9 }
 0x20d   :  { %895 = vst [vmem:[%s1548_s5 + $0x10] sm:$0xff] %v891_v17  ;;  %v892_v24 = vmax.f32 %v1185_v21, 0.0 }
 0x20e   :  { %893 = vst [vmem:[%s1548_s5] sm:$0xff] %v889_v22  ;;  %v890_v25 = vmax.f32 %v1189_v23, 0.0 }
 0x20f   :  { %896 = vst [vmem:[%s1548_s5 + $0x18] sm:$0xff] %v892_v24 }
 0x210   :  { %894 = vst [vmem:[%s1548_s5 + $0x8] sm:$0xff] %v890_v25 }

</bundles_post_ra>
